<compile_context>
chip_gen: v5e
topology: v5e:2x2
jax: 0.10.0
libtpu: 0.0.40
codegen_flags: <defaults>
</compile_context>

<pallas_src>
import functools

import jax
import jax.numpy as jnp
from jax import lax
from jax.experimental import pallas as pl
from jax.experimental.pallas import tpu as pltpu


# ---------------------------------------------------------------------------
# Per-generation VMEM budget (static Python, trace-time only).
# ---------------------------------------------------------------------------
def _vmem_budget():
    """Returns (physical_vmem_bytes, vmem_limit_bytes)."""
    phys = None
    try:
        info = pltpu.get_tpu_info()
        phys = int(getattr(info, "vmem_capacity_bytes"))
    except Exception:
        phys = None
    if not phys:
        phys = 64 * 1024 * 1024  # conservative default: v7x per-TensorCore VMEM
    limit = min((phys * 3) // 4, 96 * 1024 * 1024)  # v7x -> 48 MiB, v5e/v6e -> 96 MiB
    return phys, limit


# ---------------------------------------------------------------------------
# Tile-size helpers (static Python math on shapes).
# ---------------------------------------------------------------------------
def _round_down(x, m):
    return max(m, (x // m) * m)


def _pick_lane_tile(total, bytes_per_lane, target_bytes):
    """Lane-axis tile: full extent whenever it fits the byte budget (a block
    dim equal to the array dim is legal even if not a multiple of 128); only
    fall back to a multiple of 128 when the full dim is genuinely too big."""
    if total <= 128 or total * bytes_per_lane <= target_bytes:
        return total
    t = min(total, max(128, target_bytes // max(1, bytes_per_lane)))
    return _round_down(t, 128)


def _phase2_tiles(bc, hw, itemsize, target_bytes):
    """Lane-dense (rows, lanes) tile for the broadcast-multiply."""
    t_hw = _pick_lane_tile(hw, 8 * itemsize, target_bytes)
    rows = max(8, target_bytes // max(1, t_hw * itemsize))
    t_bc = bc if bc <= rows else _round_down(min(rows, bc), 8)
    return t_bc, t_hw


# ---------------------------------------------------------------------------
# Fused kernel: pool + excite + scale on a resident (1, C, HW) slab.
# ---------------------------------------------------------------------------
def _fused_kernel(x_ref, w1_ref, b1_ref, w2_ref, b2_ref, o_ref):
    # x_ref/o_ref: (1, C, HW); w1: (C, Cr); b1: (1, Cr); w2: (Cr, C); b2: (1, C)
    xt = x_ref[...].astype(jnp.float32)                       # (1, C, HW)
    pooled = jnp.mean(xt, axis=-1)                            # (1, C)
    h = jnp.dot(pooled, w1_ref[...],
                preferred_element_type=jnp.float32) + b1_ref[...]
    h = jnp.maximum(h, 0.0)
    z = jnp.dot(h, w2_ref[...],
                preferred_element_type=jnp.float32) + b2_ref[...]
    z = jax.nn.sigmoid(z)                                     # (1, C)
    # Multiply in f32, cast once on store (matches reference numerics).
    o_ref[...] = (xt * z[:, :, None]).astype(o_ref.dtype)


# ---------------------------------------------------------------------------
# Fallback phase 1: tiled spatial-sum reduction + excite at the last HW step.
# ---------------------------------------------------------------------------
def _make_pool_excite_kernel(hw_total, t_hw):
    inv_hw = 1.0 / float(hw_total)
    need_mask = (hw_total % t_hw) != 0

    def kernel(x_ref, w1_ref, b1_ref, w2_ref, b2_ref, z_ref, acc_ref):
        # x_ref: (1, C, t_hw); z_ref: (1, 1, C) f32 out; acc_ref: (1, C) f32.
        h_idx = pl.program_id(1)
        last = pl.num_programs(1) - 1

        @pl.when(h_idx == 0)
        def _init():
            acc_ref[...] = jnp.zeros_like(acc_ref)

        if need_mask:
            # Only the ragged boundary tile pays the iota/where mask.
            @pl.when(h_idx < last)
            def _interior():
                acc_ref[...] += jnp.sum(x_ref[...].astype(jnp.float32), axis=-1)

            @pl.when(h_idx == last)
            def _boundary():
                xt = x_ref[...].astype(jnp.float32)
                lane = lax.broadcasted_iota(jnp.int32, xt.shape, 2)
                xt = jnp.where(h_idx * t_hw + lane < hw_total, xt, 0.0)
                acc_ref[...] += jnp.sum(xt, axis=-1)
        else:
            acc_ref[...] += jnp.sum(x_ref[...].astype(jnp.float32), axis=-1)

        @pl.when(h_idx == last)
        def _finalize():
            pooled = acc_ref[...] * inv_hw                    # exact mean over H*W
            h = jnp.dot(pooled, w1_ref[...],
                        preferred_element_type=jnp.float32) + b1_ref[...]
            h = jnp.maximum(h, 0.0)
            z = jnp.dot(h, w2_ref[...],
                        preferred_element_type=jnp.float32) + b2_ref[...]
            z = jax.nn.sigmoid(z)                             # (1, C)
            z_ref[...] = z[None, :, :]

    return kernel


# ---------------------------------------------------------------------------
# Fallback phase 2: lane-dense broadcast-multiply (f32 math, cast on store).
# ---------------------------------------------------------------------------
def _scale_kernel(x_ref, z_ref, o_ref):
    # x_ref/o_ref: (t_bc, t_hw); z_ref: (t_bc, 1) f32, resident across inner j.
    o_ref[...] = (x_ref[...].astype(jnp.float32) * z_ref[...]).astype(o_ref.dtype)


# ---------------------------------------------------------------------------
# Wrapper
# ---------------------------------------------------------------------------
@functools.partial(jax.jit, static_argnames=("force_two_phase",))
def se_attention(x_nchw, w1, b1, w2, b2, force_two_phase=False):
    """x: (B, C, H, W); w1: (Cr, C) torch-style, b1: (Cr,), w2: (C, Cr), b2: (C,)."""
    B, C, H, W = x_nchw.shape
    Cr = w1.shape[0]
    HW = H * W
    itemsize = jnp.dtype(x_nchw.dtype).itemsize

    phys_vmem, vmem_limit = _vmem_budget()

    x3d = x_nchw.reshape(B, C, HW)
    w1_t = w1.T                      # (C, Cr)
    w2_t = w2.T                      # (Cr, C)
    b1_2d = b1.reshape(1, Cr)
    b2_2d = b2.reshape(1, C)

    # ---- Fused path: x read once, written once (memory-bound optimum) -------
    # VMEM need ~ 2x in + 2x out (double-buffered, x dtype) + ~2 f32 temps.
    fused_need = C * HW * (4 * itemsize + 8)
    if (not force_two_phase) and fused_need <= vmem_limit // 2:
        out3d = pl.pallas_call(
            _fused_kernel,
            out_shape=jax.ShapeDtypeStruct((B, C, HW), x_nchw.dtype),
            grid=(B,),
            in_specs=[
                pl.BlockSpec((1, C, HW), lambda b: (b, 0, 0)),
                pl.BlockSpec((C, Cr), lambda b: (0, 0)),
                pl.BlockSpec((1, Cr), lambda b: (0, 0)),
                pl.BlockSpec((Cr, C), lambda b: (0, 0)),
                pl.BlockSpec((1, C), lambda b: (0, 0)),
            ],
            out_specs=pl.BlockSpec((1, C, HW), lambda b: (b, 0, 0)),
            compiler_params=pltpu.CompilerParams(
                dimension_semantics=("parallel",),
                vmem_limit_bytes=vmem_limit),
        )(x3d, w1_t, b1_2d, w2_t, b2_2d)
        return out3d.reshape(B, C, H, W)

    # ---- Fallback two-phase path (per-batch slab too big for VMEM) ----------
    # Per-block byte targets derived from the per-generation VMEM limit.
    t1_target = max(1 << 20, min(4 << 20, vmem_limit // 16))
    t2_target = max(2 << 20, min(8 << 20, vmem_limit // 10))

    # Phase 1: pooled mean + excite -> z of shape (B, 1, C), f32.
    t_hw1 = _pick_lane_tile(HW, C * itemsize, t1_target)
    n_hw1 = pl.cdiv(HW, t_hw1)
    z = pl.pallas_call(
        _make_pool_excite_kernel(HW, t_hw1),
        out_shape=jax.ShapeDtypeStruct((B, 1, C), jnp.float32),
        grid=(B, n_hw1),
        in_specs=[
            pl.BlockSpec((1, C, t_hw1), lambda b, h: (b, 0, h)),
            pl.BlockSpec((C, Cr), lambda b, h: (0, 0)),
            pl.BlockSpec((1, Cr), lambda b, h: (0, 0)),
            pl.BlockSpec((Cr, C), lambda b, h: (0, 0)),
            pl.BlockSpec((1, C), lambda b, h: (0, 0)),
        ],
        out_specs=pl.BlockSpec((1, 1, C), lambda b, h: (b, 0, 0)),
        scratch_shapes=[pltpu.VMEM((1, C), jnp.float32)],
        compiler_params=pltpu.CompilerParams(
            dimension_semantics=("parallel", "arbitrary"),
            vmem_limit_bytes=vmem_limit),
    )(x3d, w1_t, b1_2d, w2_t, b2_2d)

    # Phase 2: x * z on a lane-dense (B*C, HW) layout.
    BC = B * C
    x2d = x_nchw.reshape(BC, HW)
    z2d = z.reshape(BC, 1)           # row b*C + c matches x2d row b*C + c
    t_bc, t_hw2 = _phase2_tiles(BC, HW, itemsize, t2_target)
    # NOTE: keep the row-tile axis (i) OUTER — the (t_bc, 1) z block index is
    # constant across consecutive inner j steps, so z stays VMEM-resident and
    # is never re-DMA'd per HW step.  Do not reorder the grid.
    out2d = pl.pallas_call(
        _scale_kernel,
        out_shape=jax.ShapeDtypeStruct((BC, HW), x_nchw.dtype),
        grid=(pl.cdiv(BC, t_bc), pl.cdiv(HW, t_hw2)),
        in_specs=[
            pl.BlockSpec((t_bc, t_hw2), lambda i, j: (i, j)),
            pl.BlockSpec((t_bc, 1), lambda i, j: (i, 0)),
        ],
        out_specs=pl.BlockSpec((t_bc, t_hw2), lambda i, j: (i, j)),
        compiler_params=pltpu.CompilerParams(
            dimension_semantics=("parallel", "parallel"),
            vmem_limit_bytes=vmem_limit),
    )(x2d, z2d)

    return out2d.reshape(B, C, H, W)


def se_attention_ref(x_nchw, w1, b1, w2, b2):
    """Pure-JAX reference mirroring the PyTorch forward."""
    xf = x_nchw.astype(jnp.float32)
    y = jnp.mean(xf, axis=(2, 3))                    # adaptive_avg_pool2d + squeeze
    y = jnp.maximum(y @ w1.T + b1, 0.0)              # fc_e1 + ReLU
    y = jax.nn.sigmoid(y @ w2.T + b2)                # fc_e2 + sigmoid
    return (xf * y[:, :, None, None]).astype(x_nchw.dtype)


if __name__ == "__main__":
    # Module config: channel_num=16, r=4 -> inter_channel=4.  H=W=24 (HW=576)
    # exercises the fused path; the fallback two-phase path (with its tiled
    # reduction and lane-dense scale) is also exercised explicitly.
    B, C, H, W = 2, 16, 24, 24
    r = 4
    Cr = C // r

    key = jax.random.PRNGKey(0)
    kx, k1, k2, k3, k4 = jax.random.split(key, 5)

    x = jax.random.normal(kx, (B, C, H, W), dtype=jnp.float32)

    # Init mimicking torch.nn.Linear (uniform(-1/sqrt(fan_in), 1/sqrt(fan_in)))
    bound1 = 1.0 / jnp.sqrt(C)
    w1 = jax.random.uniform(k1, (Cr, C), minval=-bound1, maxval=bound1, dtype=jnp.float32)
    b1 = jax.random.uniform(k2, (Cr,), minval=-bound1, maxval=bound1, dtype=jnp.float32)
    bound2 = 1.0 / jnp.sqrt(Cr)
    w2 = jax.random.uniform(k3, (C, Cr), minval=-bound2, maxval=bound2, dtype=jnp.float32)
    b2 = jax.random.uniform(k4, (C,), minval=-bound2, maxval=bound2, dtype=jnp.float32)

    ref = se_attention_ref(x, w1, b1, w2, b2)

    # Fused (default) path.
    out_fused = jax.block_until_ready(se_attention(x, w1, b1, w2, b2))
    assert out_fused.shape == (B, C, H, W)
    assert jnp.allclose(out_fused, ref, atol=1e-5, rtol=1e-5), \
        "Pallas fused output mismatch vs reference"

    # Fallback two-phase path (forced) — keeps the big-slab codepath compiled
    # and correctness-checked.
    out_2p = jax.block_until_ready(
        se_attention(x, w1, b1, w2, b2, force_two_phase=True))
    assert jnp.allclose(out_2p, ref, atol=1e-5, rtol=1e-5), \
        "Pallas two-phase output mismatch vs reference"

    print("KERNEL_OK")
</pallas_src>

<mosaic_0001>
module attributes {stable_mosaic.version = 11 : i64} {
  func.func @_fused_kernel(%arg0: i32, %arg1: memref<1x16x576xf32, #tpu.memory_space<vmem>>, %arg2: memref<16x4xf32, #tpu.memory_space<vmem>>, %arg3: memref<1x4xf32, #tpu.memory_space<vmem>>, %arg4: memref<4x16xf32, #tpu.memory_space<vmem>>, %arg5: memref<1x16xf32, #tpu.memory_space<vmem>>, %arg6: memref<1x16x576xf32, #tpu.memory_space<vmem>>) attributes {dimension_semantics = [#tpu.dimension_semantics<parallel>], iteration_bounds = array<i64: 2>, scalar_prefetch = 0 : i64, scratch_operands = 0 : i64, tpu.core_type = #tpu.core_type<tc>, window_params = [{transform_indices = @transform_0, window_bounds = array<i64: 1, 16, 576>}, {pipeline_mode = #tpu.pipeline_mode<synchronous>, transform_indices = @transform_1, window_bounds = array<i64: 16, 4>}, {pipeline_mode = #tpu.pipeline_mode<synchronous>, transform_indices = @transform_2, window_bounds = array<i64: 1, 4>}, {pipeline_mode = #tpu.pipeline_mode<synchronous>, transform_indices = @transform_3, window_bounds = array<i64: 4, 16>}, {pipeline_mode = #tpu.pipeline_mode<synchronous>, transform_indices = @transform_4, window_bounds = array<i64: 1, 16>}, {transform_indices = @transform_5, window_bounds = array<i64: 1, 16, 576>}]} {
    %c0 = arith.constant 0 : index
    %c0_0 = arith.constant 0 : index
    %c0_1 = arith.constant 0 : index
    %0 = vector.load %arg1[%c0, %c0_0, %c0_1] : memref<1x16x576xf32, #tpu.memory_space<vmem>>, vector<1x16x576xf32>
    %cst = arith.constant dense<0.000000e+00> : vector<1x16xf32>
    %1 = vector.multi_reduction <add>, %0, %cst [2] : vector<1x16x576xf32> to vector<1x16xf32>
    %cst_2 = arith.constant 5.760000e+02 : f32
    %2 = vector.broadcast %cst_2 : f32 to vector<1x16xf32>
    %3 = arith.divf %1, %2 : vector<1x16xf32>
    %c0_3 = arith.constant 0 : index
    %c0_4 = arith.constant 0 : index
    %4 = vector.load %arg2[%c0_3, %c0_4] : memref<16x4xf32, #tpu.memory_space<vmem>>, vector<16x4xf32>
    %cst_5 = arith.constant dense<0.000000e+00> : vector<1x4xf32>
    %5 = tpu.matmul %3, %4, %cst_5 {dimension_numbers = #tpu.dot_dimension_numbers<[1], [0], [0], [1], [0, 0, 1, 1], [], []>} : vector<1x16xf32>, vector<16x4xf32>, vector<1x4xf32> -> vector<1x4xf32>
    %c0_6 = arith.constant 0 : index
    %c0_7 = arith.constant 0 : index
    %6 = vector.load %arg3[%c0_6, %c0_7] : memref<1x4xf32, #tpu.memory_space<vmem>>, vector<1x4xf32>
    %7 = arith.addf %5, %6 : vector<1x4xf32>
    %cst_8 = arith.constant 0.000000e+00 : f32
    %8 = vector.broadcast %cst_8 : f32 to vector<1x4xf32>
    %9 = arith.maximumf %7, %8 : vector<1x4xf32>
    %c0_9 = arith.constant 0 : index
    %c0_10 = arith.constant 0 : index
    %10 = vector.load %arg4[%c0_9, %c0_10] : memref<4x16xf32, #tpu.memory_space<vmem>>, vector<4x16xf32>
    %cst_11 = arith.constant dense<0.000000e+00> : vector<1x16xf32>
    %11 = tpu.matmul %9, %10, %cst_11 {dimension_numbers = #tpu.dot_dimension_numbers<[1], [0], [0], [1], [0, 0, 1, 1], [], []>} : vector<1x4xf32>, vector<4x16xf32>, vector<1x16xf32> -> vector<1x16xf32>
    %c0_12 = arith.constant 0 : index
    %c0_13 = arith.constant 0 : index
    %12 = vector.load %arg5[%c0_12, %c0_13] : memref<1x16xf32, #tpu.memory_space<vmem>>, vector<1x16xf32>
    %13 = arith.addf %11, %12 : vector<1x16xf32>
    %14 = arith.negf %13 : vector<1x16xf32>
    %15 = math.exp %14 : vector<1x16xf32>
    %cst_14 = arith.constant 1.000000e+00 : f32
    %16 = vector.broadcast %cst_14 : f32 to vector<1x16xf32>
    %17 = arith.addf %16, %15 : vector<1x16xf32>
    %18 = arith.divf %16, %17 : vector<1x16xf32>
    %19 = vector.shape_cast %18 : vector<1x16xf32> to vector<1x16x1xf32>
    %20 = vector.broadcast %19 : vector<1x16x1xf32> to vector<1x16x576xf32>
    %21 = arith.mulf %0, %20 : vector<1x16x576xf32>
    %c0_15 = arith.constant 0 : index
    %c0_16 = arith.constant 0 : index
    %c0_17 = arith.constant 0 : index
    %22 = vector.load %arg6[%c0_15, %c0_16, %c0_17] : memref<1x16x576xf32, #tpu.memory_space<vmem>>, vector<1x16x576xf32>
    tpu.vector_store %arg6[%c0_15, %c0_16, %c0_17], %21 {strides = array<i32>} : memref<1x16x576xf32, #tpu.memory_space<vmem>>, vector<1x16x576xf32>,
    return
  }
  func.func @transform_0(%arg0: i32) -> (i32, i32, i32) {
    %c0_i32 = arith.constant 0 : i32
    %c0_i32_0 = arith.constant 0 : i32
    %c0_i32_1 = arith.constant 0 : i32
    return %arg0, %c0_i32, %c0_i32_0 : i32, i32, i32
  }
  func.func @transform_1(%arg0: i32) -> (i32, i32) {
    %c0_i32 = arith.constant 0 : i32
    %c0_i32_0 = arith.constant 0 : i32
    %c0_i32_1 = arith.constant 0 : i32
    return %c0_i32, %c0_i32_0 : i32, i32
  }
  func.func @transform_2(%arg0: i32) -> (i32, i32) {
    %c0_i32 = arith.constant 0 : i32
    %c0_i32_0 = arith.constant 0 : i32
    %c0_i32_1 = arith.constant 0 : i32
    return %c0_i32, %c0_i32_0 : i32, i32
  }
  func.func @transform_3(%arg0: i32) -> (i32, i32) {
    %c0_i32 = arith.constant 0 : i32
    %c0_i32_0 = arith.constant 0 : i32
    %c0_i32_1 = arith.constant 0 : i32
    return %c0_i32, %c0_i32_0 : i32, i32
  }
  func.func @transform_4(%arg0: i32) -> (i32, i32) {
    %c0_i32 = arith.constant 0 : i32
    %c0_i32_0 = arith.constant 0 : i32
    %c0_i32_1 = arith.constant 0 : i32
    return %c0_i32, %c0_i32_0 : i32, i32
  }
  func.func @transform_5(%arg0: i32) -> (i32, i32, i32) {
    %c0_i32 = arith.constant 0 : i32
    %c0_i32_0 = arith.constant 0 : i32
    %c0_i32_1 = arith.constant 0 : i32
    return %arg0, %c0_i32, %c0_i32_0 : i32, i32, i32
  }
}

</mosaic_0001>

<bundles_post_ra>
// kernel: se_attention.1
= control target key start
LH: loop header
LB: loop body
LE: loop exit
PB: predicated region body
PF: predicated region fallthrough
CT: control target
= control target key end

     0   :  { %s503_s18 = smov 0   ;;  %s586_s0 = inlined_call_operand.vmem [shape: f32[2,16,576], index: 0, kind: input, shape index: {}]   ;;  %s587_s1 = inlined_call_operand.vmem [shape: f32[16,4], index: 1, kind: input, shape index: {}]   ;;  %s588_s2 = inlined_call_operand.vmem [shape: f32[1,4], index: 2, kind: input, shape index: {}]   ;;  %s589_s3 = inlined_call_operand.vmem [shape: f32[4,16], index: 3, kind: input, shape index: {}]   ;;  %s590_s4 = inlined_call_operand.vmem [shape: f32[1,16], index: 4, kind: input, shape index: {}]   ;;  %s591_s5 = inlined_call_operand.vmem [shape: f32[2,16,576], index: 5, kind: output, shape index: {}]  }
   0x1 LB: > { %s432_s19 = sadd.s32 4294967295, %s470_s18   ;;  %p436_p0 = scmp.ge.s32.totalorder %s470_s18, 1  ;;  %s470_s18 = sphi %s503_s18, %s15_s18  }
   0x2   : > { %p187_p1 = scmp.lt.s32.totalorder %s470_s18, 3 }
   0x4   : > { %p188_p2 = pnand %p436_p0, %p187_p1 }
   0x5   : > { %p215_p3 = scmp.lt.s32.totalorder (!%p188_p2), %s432_s19, 1 }
   0x6   : > { %191 = sbr.rel (%p188_p2) target bundleno = 579 (0x243), region = 40 }
   0xb   : > { %s593_s19 = smov (!%p215_p3, %s432_s19), 1  ;;  %vm238_vm0 = vcmask 523264   ;;  %v260_v20 = vld [vmem:[%s587_s1 + $0x8] sm:$0xff]  ;;  %v472_v21 = vmov 576.0   ;;  %v259_v22 = vld [vmem:[%s587_s1] sm:$0xff]  ;;  %v264_v29 = vlaneseq  ;;  %vm269_vm2 = vcmask 130112  }
   0xc   : > { %s445_s20 = smul.u32 80, %s593_s19  ;;  %458 = vrcp.f32 %v472_v21  ;;  %288 = vmatpush.msra.mxu0 %v260_v20  ;;  %vm271_vm3 = vcmask 130048   ;;  %v295_v39 = vld [vmem:[%s589_s3] sm:$0xf]  ;;  %vm301_vm4 = vcmask 1043456   ;;  %vm297_vm5 = vcmask 31744  }
   0xd   : > { %v265_v31 = vand.u32 127, %v264_v29  ;;  %440 = vmatpush.msk.msra.mxu1 %vm301_vm4, %v295_v39  ;;  %v261_v40 = vld [vmem:[%s588_s2] sm:$0x1]  ;;  %v346_v44 = vshrl.u32 %v264_v29, 7 }
   0xe   : > { %s219_s23 = scalar_lea.vmem %s586_s0, %s445_s20  ;;  %289 = vmatpush.msra.mxu0 %v259_v22  ;;  %v296_v46 = vld [vmem:[%s590_s4] sm:$0x1]  ;;  %s224_s11 = scalar_lea.vmem %s591_s5, %s445_s20 }
   0xf   : > { %v519_v0 = vld [vmem:[%s219_s23] sm:$0xff]  ;;  %v521_v1 = vld [vmem:[%s219_s23 + $0x8] sm:$0xff]  ;;  %v523_v2 = vld [vmem:[%s219_s23 + $0x10] sm:$0xff]  ;;  %v267_v33 = vadd.s32 4294967288, %v265_v31  ;;  %455 = vset.pattern.permute.xlu1 %v346_v44  ;;  %v353_v45 = vadd.s32 8, %v346_v44 }
  0x10   : > { %v525_v3 = vld [vmem:[%s219_s23 + $0x20] sm:$0xff]  ;;  %v235_v4 = vadd.f32 %v521_v1, %v519_v0  ;;  %v529_v5 = vld [vmem:[%s219_s23 + $0x28] sm:$0xff]  ;;  %v531_v6 = vld [vmem:[%s219_s23 + $0x18] sm:$0xff] }
  0x11   : > { %v533_v7 = vld [vmem:[%s219_s23 + $0x30] sm:$0xff]  ;;  %v535_v8 = vld [vmem:[%s219_s23 + $0x38] sm:$0xff]  ;;  %v239_v11 = vsel %vm238_vm0, %v525_v3, 0.0  ;;  %v544_v14 = vld [vmem:[%s219_s23 + $0x40] sm:$0xff]  ;;  %457 = vset.pattern.permute.xlu0 %v353_v45 }
  0x12   : > { %v236_v9 = vadd.f32 %v235_v4, %v523_v2  ;;  %v243_v10 = vadd.f32 %v533_v7, %v529_v5  ;;  %v546_v16 = vld [vmem:[%s219_s23 + $0x48] sm:$0xff]  ;;  %v459_v23 = vpop.eup %458 }
  0x13   : > { %v246_v18 = vsel %vm238_vm0, %v546_v16, 0.0  ;;  %v251_v24 = vmul.f32 576.0, %v459_v23  ;;  %vm255_vm1 = vweird.f32 %v459_v23 }
  0x14   : > { %v237_v12 = vadd.f32 %v236_v9, %v531_v6  ;;  %v244_v13 = vadd.f32 %v243_v10, %v535_v8 }
  0x15   : > { %v252_v25 = vsub.f32 1.0, %v251_v24 }
  0x16   : > { %v240_v15 = vadd.f32 %v239_v11, %v237_v12  ;;  %v245_v17 = vadd.f32 %v244_v13, %v544_v14 }
  0x17   : > { %v253_v26 = vmul.f32 %v459_v23, %v252_v25 }
  0x18   : > { %241 = vadd.xlane.f32.xlu0 %v240_v15  ;;  %v247_v19 = vadd.f32 %v246_v18, %v245_v17 }
  0x19   : > { %v254_v27 = vadd.f32 %v459_v23, %v253_v26 }
  0x1b   : > { %v256_v30 = vsel %vm255_vm1, %v459_v23, %v254_v27 }
  0x20   : > { %248 = vadd.xlane.f32.xlu0 %v247_v19 }
  0x8b   : > { %v242_v28 = vpop.xlane.xlu0 %241 }
  0x8c   : > { %v257_v32 = vmul.f32 %v256_v30, %v242_v28 }
  0x8e   : > { %v266_v36 = vperm.slane %v257_v32, %v265_v31 }
  0x93   : > { %v249_v34 = vpop.xlane.xlu0 %248 }
  0x94   : > { %v258_v35 = vmul.f32 %v256_v30, %v249_v34 }
  0x96   : > { %v268_v37 = vperm.slane %v258_v35, %v267_v33 }
  0x98   : > { %v270_v38 = vsel %vm269_vm2, %v268_v37, %v266_v36 }
  0x99   : > { %439 = vmatmul.msk.f32.vlgmr.msra.gmra.mxu0 %vm271_vm3, %v270_v38 }
 0x116   : > { %v291_v41 = vpop.f32.mrf.mxu0 }
 0x117   : > { %v292_v42 = vadd.f32 %v291_v41, %v261_v40 }
 0x119   : > { %v294_v43 = vmax.f32 %v292_v42, 0.0 }
 0x11b   : > { %441 = vmatmul.msk.f32.vlgmr.msra.gmra.mxu1 %vm297_vm5, %v294_v43 }
 0x198   : > { %v322_v47 = vpop.f32.mrf.mxu1 }
 0x199   : > { %v323_v48 = vadd.f32 %v322_v47, %v296_v46 }
 0x19b   : > { %v442_v49 = vmul.f32 -1.442695, %v323_v48 }
 0x19d   : > { %460 = vpow2.f32 %v442_v49 }
 0x1a3   : > { %v461_v50 = vpop.eup %460 }
 0x1a4   : > { %v328_v51 = vadd.f32 1.0, %v461_v50 }
 0x1a6   : > { %462 = vrcp.f32 %v328_v51  ;;  %v340_v55 = vand.u32 2147483648, %v328_v51  ;;  %v338_v57 = vand.u32 2147483647, %v328_v51  ;;  %vm334_vm7 = vweird.f32 %v328_v51 }
 0x1a8   : > { %v341_v59 = vor.u32 1.1754944e-38, %v340_v55  ;;  %vm339_vm9 = vcmp.eq.f32.partialorder %v338_v57, 8.507059e+37 }
 0x1ac   : > { %v463_v52 = vpop.eup %462 }
 0x1ad   : > { %v330_v53 = vmul.f32 %v463_v52, %v328_v51  ;;  %vm335_vm6 = vweird.f32 %v463_v52 }
 0x1ae   : > { %vm336_vm8 = vmor %vm334_vm7, %vm335_vm6 }
 0x1af   : > { %v331_v54 = vsub.f32 1.0, %v330_v53 }
 0x1b1   : > { %v332_v56 = vmul.f32 %v463_v52, %v331_v54 }
 0x1b3   : > { %v333_v58 = vadd.f32 %v463_v52, %v332_v56 }
 0x1b5   : > { %v337_v60 = vsel %vm336_vm8, %v463_v52, %v333_v58 }
 0x1b6   : > { %v342_v61 = vsel %vm339_vm9, %v341_v59, %v337_v60 }
 0x1b7   : > { %v344_v62 = vperm.slane %v342_v61, 0 }
 0x1b9   : > { %349 = vperm.xlu1 %455, %v344_v62  }
 0x1c1   : > { %456 = vset.pattern.permute.xlu1 %v353_v45 }
 0x1c9   : > { %355 = vperm.xlu1 %456, %v344_v62  }
 0x22b   : > { %v350_v63 = vpop.permute.xlu1 %349 }
 0x22c   : > { %v357_v4 = vmul.f32 %v350_v63, %v519_v0  ;;  %v358_v9 = vmul.f32 %v350_v63, %v521_v1  ;;  %v359_v10 = vmul.f32 %v350_v63, %v523_v2  ;;  %v360_v11 = vmul.f32 %v350_v63, %v531_v6 }
 0x22d   : > { %v361_v12 = vmul.f32 %v350_v63, %v525_v3 }
 0x22e   : > { %367 = vst [vmem:[%s224_s11] sm:$0xff] %v357_v4 }
 0x22f   : > { %368 = vst [vmem:[%s224_s11 + $0x8] sm:$0xff] %v358_v9 }
 0x230   : > { %369 = vst [vmem:[%s224_s11 + $0x10] sm:$0xff] %v359_v10 }
 0x231   : > { %370 = vst [vmem:[%s224_s11 + $0x18] sm:$0xff] %v360_v11 }
 0x232   : > { %371 = vst.msk [vmem:[%s224_s11 + $0x20] sm:$0xff] %vm238_vm0, %v361_v12 }
 0x23b   : > { %v356_v13 = vpop.permute.xlu1 %355 }
 0x23c   : > { %v362_v15 = vmul.f32 %v356_v13, %v529_v5  ;;  %v363_v17 = vmul.f32 %v356_v13, %v533_v7  ;;  %v364_v0 = vmul.f32 %v356_v13, %v535_v8  ;;  %v365_v1 = vmul.f32 %v356_v13, %v544_v14 }
 0x23d   : > { %v366_v2 = vmul.f32 %v356_v13, %v546_v16 }
 0x23e   : > { %372 = vst [vmem:[%s224_s11 + $0x28] sm:$0xff] %v362_v15 }
 0x23f   : > { %373 = vst [vmem:[%s224_s11 + $0x30] sm:$0xff] %v363_v17 }
 0x240   : > { %374 = vst [vmem:[%s224_s11 + $0x38] sm:$0xff] %v364_v0 }
 0x241   : > { %375 = vst [vmem:[%s224_s11 + $0x40] sm:$0xff] %v365_v1 }
 0x242   : > { %376 = vst.msk [vmem:[%s224_s11 + $0x48] sm:$0xff] %vm238_vm0, %v366_v2 }
 0x243 PF: > { %s15_s18 = sadd.s32 1, %s470_s18  }
 0x244   : > { %p12_p4 = scmp.ge.s32.totalorder %s15_s18, 4  }
 0x246   :  { %14 = sbr.rel (!%p12_p4) target bundleno = 1 (0x1), region = 70 }

</bundles_post_ra>
